<compile_context>
chip_gen: v7x
topology: tpu7x:2x2x1
jax: 0.10.0
libtpu: 0.0.40
codegen_flags: <defaults>
</compile_context>

<pallas_src>
import functools

import jax
import jax.numpy as jnp
from jax import lax
from jax.experimental import pallas as pl
from jax.experimental.pallas import tpu as pltpu


def _round_up(n, m):
    return ((n + m - 1) // m) * m


# ----------------------------- kernels --------------------------------------


def _cbr_kernel_single_k(x_ref, w_ref, scale_ref, shift_ref, o_ref, *, use_relu):
    # grid = (M tiles, N tiles); the whole K dim is in the block -> no accumulator.
    y = jnp.dot(x_ref[...], w_ref[...], preferred_element_type=jnp.float32)
    y = y * scale_ref[...] + shift_ref[...]          # folded conv-bias + BN (f32 epilogue)
    if use_relu:
        y = jnp.maximum(y, 0.0)
    o_ref[...] = y.astype(o_ref.dtype)


def _cbr_kernel_tiled_k(x_ref, w_ref, scale_ref, shift_ref, o_ref, acc_ref, *, use_relu):
    # grid = (M tiles, N tiles, K tiles); K last ("arbitrary") with a resident accumulator.
    @pl.when(pl.program_id(2) == 0)
    def _():
        acc_ref[...] = jnp.zeros_like(acc_ref)

    acc_ref[...] += jnp.dot(x_ref[...], w_ref[...], preferred_element_type=jnp.float32)

    @pl.when(pl.program_id(2) == pl.num_programs(2) - 1)
    def _():
        y = acc_ref[...] * scale_ref[...] + shift_ref[...]
        if use_relu:
            y = jnp.maximum(y, 0.0)
        o_ref[...] = y.astype(o_ref.dtype)


# ----------------------------- fused GEMM ------------------------------------

_K_SINGLE_BLOCK_MAX = 1024   # below this, pass the whole K per block (no K grid axis)


def _fused_gemm(X, Wmat, scale, shift, *, use_relu, out_dtype, compute_dtype):
    M, K = X.shape
    Cout = Wmat.shape[1]

    # --- tile selection: never pad small K / Cout to 128 ---
    if M <= 256:
        tm = _round_up(M, 8)
    elif M >= 2048:
        tm = 512
    else:
        tm = 256                     # >=2 M tiles keeps both v7x TensorCores busy
    if Cout <= 512:
        tn = Cout                    # full-dim block is legal; no N padding / writeback waste
    else:
        tn = 256                     # fills v6e/v7x 256-wide MXU (also fine on v5e)
    Mp = _round_up(M, tm)
    Np = _round_up(Cout, tn)

    Xc = X.astype(compute_dtype)     # bf16 inputs: MXU-native, halves HBM traffic
    Wc = Wmat.astype(compute_dtype)
    if Mp != M:
        Xc = jnp.pad(Xc, ((0, Mp - M), (0, 0)))
    if Np != Cout:
        Wc = jnp.pad(Wc, ((0, 0), (0, Np - Cout)))
    sp = jnp.pad(scale.reshape(1, -1).astype(jnp.float32), ((0, 0), (0, Np - Cout)))
    hp = jnp.pad(shift.reshape(1, -1).astype(jnp.float32), ((0, 0), (0, Np - Cout)))

    if K <= _K_SINGLE_BLOCK_MAX:
        Kp = K
        grid = (Mp // tm, Np // tn)
        kernel = functools.partial(_cbr_kernel_single_k, use_relu=use_relu)
        grid_spec = pltpu.PrefetchScalarGridSpec(
            num_scalar_prefetch=0,
            grid=grid,
            in_specs=[
                pl.BlockSpec((tm, K), lambda i, j: (i, 0)),   # X: whole (unpadded) K
                pl.BlockSpec((K, tn), lambda i, j: (0, j)),   # W: whole (unpadded) K
                pl.BlockSpec((1, tn), lambda i, j: (0, j)),   # folded scale
                pl.BlockSpec((1, tn), lambda i, j: (0, j)),   # folded shift (bias + BN)
            ],
            out_specs=pl.BlockSpec((tm, tn), lambda i, j: (i, j)),
        )
        dim_sem = ("parallel", "parallel")
    else:
        tk = 512
        Kp = _round_up(K, tk)
        Xc = jnp.pad(Xc, ((0, 0), (0, Kp - K)))
        Wc = jnp.pad(Wc, ((0, Kp - K), (0, 0)))
        grid = (Mp // tm, Np // tn, Kp // tk)
        kernel = functools.partial(_cbr_kernel_tiled_k, use_relu=use_relu)
        grid_spec = pltpu.PrefetchScalarGridSpec(
            num_scalar_prefetch=0,
            grid=grid,
            in_specs=[
                pl.BlockSpec((tm, tk), lambda i, j, k: (i, k),
                             pipeline_mode=pl.Buffered(3)),   # hide X DMA latency
                pl.BlockSpec((tk, tn), lambda i, j, k: (k, j)),
                pl.BlockSpec((1, tn), lambda i, j, k: (0, j)),
                pl.BlockSpec((1, tn), lambda i, j, k: (0, j)),
            ],
            out_specs=pl.BlockSpec((tm, tn), lambda i, j, k: (i, j)),
            scratch_shapes=[pltpu.VMEM((tm, tn), jnp.float32)],
        )
        dim_sem = ("parallel", "parallel", "arbitrary")

    bytes_accessed = (Xc.size * Xc.dtype.itemsize + Wc.size * Wc.dtype.itemsize
                      + Mp * Np * jnp.dtype(out_dtype).itemsize
                      + sp.size * 4 + hp.size * 4)
    cost = pl.CostEstimate(flops=2 * Mp * Kp * Np, transcendentals=0,
                           bytes_accessed=bytes_accessed)

    out = pl.pallas_call(
        kernel,
        out_shape=jax.ShapeDtypeStruct((Mp, Np), out_dtype),
        grid_spec=grid_spec,
        compiler_params=pltpu.CompilerParams(dimension_semantics=dim_sem),
        cost_estimate=cost,
    )(Xc, Wc, sp, hp)

    return out[:M, :Cout]


# ------------------------- layout / patch helpers ----------------------------


def _nchw_to_gemm_input(x, kh, kw, stride, pad):
    """NCHW -> (N*Ho*Wo, kh*kw*Cin); feature order is (kh, kw, Cin)."""
    N, C, H, W = x.shape
    Ho = (H + 2 * pad - kh) // stride + 1
    Wo = (W + 2 * pad - kw) // stride + 1
    x_nhwc = jnp.transpose(x, (0, 2, 3, 1))            # single small input transpose
    if pad:
        x_nhwc = jnp.pad(x_nhwc, ((0, 0), (pad, pad), (pad, pad), (0, 0)))

    if kh == 1 and kw == 1:
        # 1x1 conv: no im2col materialization at all — (strided) reshape only.
        xs = x_nhwc[:, ::stride, ::stride, :] if stride > 1 else x_nhwc
        xs = xs[:, :Ho, :Wo, :]
        return xs.reshape(N * Ho * Wo, C), Ho, Wo

    # k > 1: gather kh*kw strided windows, concatenate along the channel (lane) axis.
    # Single materialization of the patch matrix (no stack + big transpose).
    # TODO(synk): for large activations move this gather into the kernel (manual
    # strided loads over an (n, ho-tile) grid) so the kh*kw-replicated matrix never
    # touches HBM.
    cols = []
    for i in range(kh):
        for j in range(kw):
            cols.append(x_nhwc[:, i:i + stride * Ho:stride, j:j + stride * Wo:stride, :])
    X = jnp.concatenate(cols, axis=-1).reshape(N * Ho * Wo, kh * kw * C)
    return X, Ho, Wo


# ------------------------------ public API ------------------------------------


def convbnrelu_pallas(x, conv_w, conv_b, bn_gamma, bn_beta, bn_mean, bn_var,
                      *, stride=1, pad=0, groups=1,
                      use_bn=True, use_relu=True, use_bias=True, eps=1e-5,
                      compute_dtype=jnp.bfloat16, out_layout="NCHW"):
    # TODO(synk): groups != 1 not implemented in the GEMM path (a plain im2col GEMM
    # would silently mix channels), so keep this assert loud.
    assert groups == 1
    N, Cin, H, W = x.shape
    Cout, _, kh, kw = conv_w.shape

    X, Ho, Wo = _nchw_to_gemm_input(x, kh, kw, stride, pad)
    # Weight matrix in the same (kh, kw, Cin) feature order as the patches.
    Wmat = jnp.transpose(conv_w, (2, 3, 1, 0)).reshape(kh * kw * Cin, Cout)

    bias = (conv_b.astype(jnp.float32) if use_bias
            else jnp.zeros((Cout,), jnp.float32))
    if use_bn:
        # Inference-mode BatchNorm fold; conv bias folded into the shift.
        scale = bn_gamma / jnp.sqrt(bn_var + eps)
        shift = bn_beta - bn_mean * scale + bias * scale
    else:
        scale = jnp.ones((Cout,), jnp.float32)
        shift = bias

    out = _fused_gemm(X, Wmat, scale, shift, use_relu=use_relu,
                      out_dtype=x.dtype, compute_dtype=compute_dtype)
    out = out.reshape(N, Ho, Wo, Cout)                 # NHWC: matches the kernel layout
    if out_layout == "NHWC":
        return out
    # TODO(synk): a NHWC-consuming next layer should take the NHWC result directly
    # and skip this HBM round-trip transpose.
    return jnp.transpose(out, (0, 3, 1, 2))            # NCHW (PyTorch semantics)


# ------------------------------ reference -------------------------------------


def convbnrelu_ref(x, conv_w, conv_b, bn_gamma, bn_beta, bn_mean, bn_var,
                   *, stride=1, pad=0, use_bn=True, use_relu=True,
                   use_bias=True, eps=1e-5, cast_dtype=None):
    xx, ww = x, conv_w
    if cast_dtype is not None:
        xx, ww = xx.astype(cast_dtype), ww.astype(cast_dtype)
    out = lax.conv_general_dilated(
        xx, ww, window_strides=(stride, stride),
        padding=[(pad, pad), (pad, pad)],
        dimension_numbers=("NCHW", "OIHW", "NCHW"),
        preferred_element_type=jnp.float32)
    if use_bias:
        out = out + conv_b.reshape(1, -1, 1, 1)
    if use_bn:
        scale = bn_gamma / jnp.sqrt(bn_var + eps)
        shift = bn_beta - bn_mean * scale
        out = out * scale.reshape(1, -1, 1, 1) + shift.reshape(1, -1, 1, 1)
    if use_relu:
        out = jnp.maximum(out, 0.0)
    return out


def _check(name, out, ref_f32, ref_bf16):
    assert out.shape == ref_f32.shape, (name, out.shape, ref_f32.shape)
    err_bf16 = float(jnp.max(jnp.abs(out - ref_bf16)))   # same-rounding reference
    err_f32 = float(jnp.max(jnp.abs(out - ref_f32)))     # full-precision reference
    assert err_bf16 < 2e-3, (name, "bf16-ref err", err_bf16)
    assert err_f32 < 5e-2, (name, "f32-ref err", err_f32)


if __name__ == "__main__":
    # convbnrelu(inplanes=4, planes=8) — BatchNorm in inference mode (running stats).
    key = jax.random.PRNGKey(0)
    ks = jax.random.split(key, 8)

    N, Cin, H, W = 2, 4, 16, 16
    Cout = 8

    x = jax.random.normal(ks[0], (N, Cin, H, W), jnp.float32)
    conv_b = jax.random.normal(ks[2], (Cout,), jnp.float32) * 0.1
    bn_gamma = jax.random.normal(ks[3], (Cout,), jnp.float32) * 0.1 + 1.0
    bn_beta = jax.random.normal(ks[4], (Cout,), jnp.float32) * 0.1
    bn_mean = jax.random.normal(ks[5], (Cout,), jnp.float32) * 0.1
    bn_var = jax.nn.softplus(jax.random.normal(ks[6], (Cout,), jnp.float32)) + 0.5

    # Test 1: module defaults — kernel_size=1, stride=1, pad=0 (pure-reshape path).
    w1 = jax.random.normal(ks[1], (Cout, Cin, 1, 1), jnp.float32) * 0.1
    out1 = jax.block_until_ready(
        convbnrelu_pallas(x, w1, conv_b, bn_gamma, bn_beta, bn_mean, bn_var,
                          stride=1, pad=0))
    assert out1.shape == (N, Cout, H, W)
    _check("k1",
           out1,
           convbnrelu_ref(x, w1, conv_b, bn_gamma, bn_beta, bn_mean, bn_var,
                          stride=1, pad=0),
           convbnrelu_ref(x, w1, conv_b, bn_gamma, bn_beta, bn_mean, bn_var,
                          stride=1, pad=0, cast_dtype=jnp.bfloat16))

    # Test 2: 3x3 / stride 2 / pad 1 — exercises the k>1 patch-gather path.
    w3 = jax.random.normal(ks[7], (Cout, Cin, 3, 3), jnp.float32) * 0.1
    out3 = jax.block_until_ready(
        convbnrelu_pallas(x, w3, conv_b, bn_gamma, bn_beta, bn_mean, bn_var,
                          stride=2, pad=1))
    assert out3.shape == (N, Cout, 8, 8)
    _check("k3s2",
           out3,
           convbnrelu_ref(x, w3, conv_b, bn_gamma, bn_beta, bn_mean, bn_var,
                          stride=2, pad=1),
           convbnrelu_ref(x, w3, conv_b, bn_gamma, bn_beta, bn_mean, bn_var,
                          stride=2, pad=1, cast_dtype=jnp.bfloat16))

    print("KERNEL_OK")
</pallas_src>

<mosaic_0001>
module attributes {stable_mosaic.version = 11 : i64} {
  func.func @_cbr_kernel_single_k(%arg0: i32, %arg1: i32, %arg2: memref<256x4xbf16, #tpu.memory_space<vmem>>, %arg3: memref<4x8xbf16, #tpu.memory_space<vmem>>, %arg4: memref<1x8xf32, #tpu.memory_space<vmem>>, %arg5: memref<1x8xf32, #tpu.memory_space<vmem>>, %arg6: memref<256x8xf32, #tpu.memory_space<vmem>>) attributes {dimension_semantics = [#tpu.dimension_semantics<parallel>, #tpu.dimension_semantics<parallel>], iteration_bounds = array<i64: 2, 1>, scalar_prefetch = 0 : i64, scratch_operands = 0 : i64, tpu.core_type = #tpu.core_type<tc>, window_params = [{transform_indices = @transform_0, window_bounds = array<i64: 256, 4>}, {transform_indices = @transform_1, window_bounds = array<i64: 4, 8>}, {transform_indices = @transform_2, window_bounds = array<i64: 1, 8>}, {transform_indices = @transform_3, window_bounds = array<i64: 1, 8>}, {transform_indices = @transform_4, window_bounds = array<i64: 256, 8>}]} {
    %c0 = arith.constant 0 : index
    %c0_0 = arith.constant 0 : index
    %0 = vector.load %arg2[%c0, %c0_0] : memref<256x4xbf16, #tpu.memory_space<vmem>>, vector<256x4xbf16>
    %c0_1 = arith.constant 0 : index
    %c0_2 = arith.constant 0 : index
    %1 = vector.load %arg3[%c0_1, %c0_2] : memref<4x8xbf16, #tpu.memory_space<vmem>>, vector<4x8xbf16>
    %cst = arith.constant dense<0.000000e+00> : vector<256x8xf32>
    %2 = tpu.matmul %0, %1, %cst {dimension_numbers = #tpu.dot_dimension_numbers<[1], [0], [0], [1], [0, 0, 1, 1], [], []>} : vector<256x4xbf16>, vector<4x8xbf16>, vector<256x8xf32> -> vector<256x8xf32>
    %c0_3 = arith.constant 0 : index
    %c0_4 = arith.constant 0 : index
    %3 = vector.load %arg4[%c0_3, %c0_4] : memref<1x8xf32, #tpu.memory_space<vmem>>, vector<1x8xf32>
    %4 = vector.broadcast %3 : vector<1x8xf32> to vector<256x8xf32>
    %5 = arith.mulf %2, %4 : vector<256x8xf32>
    %c0_5 = arith.constant 0 : index
    %c0_6 = arith.constant 0 : index
    %6 = vector.load %arg5[%c0_5, %c0_6] : memref<1x8xf32, #tpu.memory_space<vmem>>, vector<1x8xf32>
    %7 = vector.broadcast %6 : vector<1x8xf32> to vector<256x8xf32>
    %8 = arith.addf %5, %7 : vector<256x8xf32>
    %cst_7 = arith.constant 0.000000e+00 : f32
    %9 = vector.broadcast %cst_7 : f32 to vector<256x8xf32>
    %10 = arith.maximumf %8, %9 : vector<256x8xf32>
    %c0_8 = arith.constant 0 : index
    %c0_9 = arith.constant 0 : index
    %11 = vector.load %arg6[%c0_8, %c0_9] : memref<256x8xf32, #tpu.memory_space<vmem>>, vector<256x8xf32>
    tpu.vector_store %arg6[%c0_8, %c0_9], %10 {strides = array<i32>} : memref<256x8xf32, #tpu.memory_space<vmem>>, vector<256x8xf32>,
    return
  }
  func.func @transform_0(%arg0: i32, %arg1: i32) -> (i32, i32) {
    %c0_i32 = arith.constant 0 : i32
    %c0_i32_0 = arith.constant 0 : i32
    return %arg0, %c0_i32 : i32, i32
  }
  func.func @transform_1(%arg0: i32, %arg1: i32) -> (i32, i32) {
    %c0_i32 = arith.constant 0 : i32
    %c0_i32_0 = arith.constant 0 : i32
    return %c0_i32, %arg1 : i32, i32
  }
  func.func @transform_2(%arg0: i32, %arg1: i32) -> (i32, i32) {
    %c0_i32 = arith.constant 0 : i32
    %c0_i32_0 = arith.constant 0 : i32
    return %c0_i32, %arg1 : i32, i32
  }
  func.func @transform_3(%arg0: i32, %arg1: i32) -> (i32, i32) {
    %c0_i32 = arith.constant 0 : i32
    %c0_i32_0 = arith.constant 0 : i32
    return %c0_i32, %arg1 : i32, i32
  }
  func.func @transform_4(%arg0: i32, %arg1: i32) -> (i32, i32) {
    %c0_i32 = arith.constant 0 : i32
    return %arg0, %arg1 : i32, i32
  }
}

</mosaic_0001>

<bundles_post_ra>
// kernel: tpu_custom_call.1
= control target key start
LH: loop header
LB: loop body
LE: loop exit
PB: predicated region body
PF: predicated region fallthrough
CT: control target
= control target key end

     0   :  { %s1043_s15 = smov 0   ;;  %s1045_s16 = smov 0   ;;  %s1257_s0 = inlined_call_operand.vmem [shape: bf16[512,4], index: 0, kind: input, shape index: {}]   ;;  %s1258_s1 = inlined_call_operand.vmem [shape: bf16[4,8], index: 1, kind: input, shape index: {}]   ;;  %s1259_s2 = inlined_call_operand.vmem [shape: f32[1,8], index: 2, kind: input, shape index: {}]   ;;  %s1260_s3 = inlined_call_operand.vmem [shape: f32[1,8], index: 3, kind: input, shape index: {}]   ;;  %s1261_s4 = inlined_call_operand.vmem [shape: f32[512,8], index: 4, kind: output, shape index: {}]  }
   0x1   :  { %s1047_s17 = smov 0  }
   0x2 LB: > { %s26_s18 = sadd.s32 1, %s1012_s16  ;;  %p858_p0 = scmp.ge.s32.totalorder %s1016_s17, 1  ;;  %s1016_s17 = sphi %s1047_s17, %s14_s17   ;;  %s1012_s16 = sphi %s1045_s16, %s1263_s16   ;;  %s1008_s15 = sphi %s1043_s15, %s1262_s15  }
   0x3   : > { %p28_p1 = scmp.ge.s32.totalorder %s26_s18, 2  ;;  %p202_p2 = scmp.lt.s32.totalorder %s1016_s17, 3 }
   0x5   : > { %s1265_s18 = smov (%p28_p1, %s26_s18), 0  ;;  %p203_p3 = pnand %p858_p0, %p202_p2 }
   0x6   : > { %v299_v0 = vld [vmem:[%s1258_s1] sm:$0x3] (!%p203_p3)  ;;  %vm429_vm0 = vcmask (!%p203_p3), 1041408   ;;  %s859_s21 = sshll.u32 (!%p203_p3), %s1008_s15, 5  ;;  %vm380_vm1 = vcmask (!%p203_p3), 31744   ;;  %vm704_vm2 = vcmask (!%p203_p3), 64512  }
   0x7   : > { %206 = sbr.rel (%p203_p3) target bundleno = 266 (0x10a), region = 36  ;;  %952 = vmatprep.subr.msk.bf16.mxu0 (!%p203_p3), %vm429_vm0, %v299_v0  ;;  %953 = vmatprep.subr.msk.bf16.mxu1 (!%p203_p3), %vm429_vm0, %v299_v0  ;;  %v431_v1 = vsel (!%p203_p3), %vm429_vm0, %v299_v0, 0  ;;  %p242_p4 = scmp.lt.s32.totalorder (!%p203_p3), %s859_s21, 63  ;;  %v1107_v18 = vld [vmem:[%s1259_s2] ss:$0 sm:$0xff] (!%p203_p3) }
   0x8   : > { %917 = vmatpush3.bf16.msra.mxu0 (!%p203_p3), %v431_v1  ;;  %951 = vmatpush3.bf16.msra.mxu1 (!%p203_p3), %v431_v1  ;;  %v1112_v20 = vld [vmem:[%s1260_s3] ss:$0 sm:$0xff] (!%p203_p3) }
   0xe   : > { %s1267_s21 = smov (!%p242_p4, %s859_s21), 63 }
   0xf   : > { %s860_s22 = sshll.u32 %s1267_s21, 2  ;;  %s862_s30 = sshll.u32 %s1267_s21, 3 }
  0x10   : > { %s1070_s25 = scalar_lea.vmem %s1257_s0, %s860_s22  ;;  %s1124_s7 = scalar_lea.vmem %s1261_s4, %s862_s30 }
  0x11   : > { %v978_v2 = vld [vmem:[%s1070_s25] sm:$0xff]   ;;  %v980_v4 = vld [vmem:[%s1070_s25 + $0x8] sm:$0xff]   ;;  %v982_v6 = vld [vmem:[%s1070_s25 + $0x10] sm:$0xff]  }
  0x12   : > { %v979_v3 = vld [vmem:[%s1070_s25 + $0x40] sm:$0xff]   ;;  %918 = vmatprep.mubr.msk.bf16.mxu0 %vm380_vm1, %v978_v2  ;;  %v981_v5 = vld [vmem:[%s1070_s25 + $0x48] sm:$0xff]   ;;  %v983_v7 = vld [vmem:[%s1070_s25 + $0x50] sm:$0xff]  }
  0x13   : > { %934 = vmatprep.mubr.msk.bf16.mxu1 %vm380_vm1, %v979_v3  ;;  %919 = vmatmul.mubr.msk.bf16.vlgmr.msra.gmra.mrb[0].mxu0 %vm380_vm1, %v980_v4  ;;  %v984_v8 = vld [vmem:[%s1070_s25 + $0x18] sm:$0xff]   ;;  %v986_v10 = vld [vmem:[%s1070_s25 + $0x20] sm:$0xff]   ;;  %v988_v12 = vld [vmem:[%s1070_s25 + $0x28] sm:$0xff]  }
  0x14   : > { %935 = vmatmul.mubr.msk.bf16.vlgmr.msra.gmra.mrb[0].mxu1 %vm380_vm1, %v981_v5  ;;  %922 = vmatprep.mubr.msk.bf16.mxu0 %vm380_vm1, %v982_v6  ;;  %v985_v9 = vld [vmem:[%s1070_s25 + $0x58] sm:$0xff]   ;;  %v987_v11 = vld [vmem:[%s1070_s25 + $0x60] sm:$0xff]   ;;  %v989_v13 = vld [vmem:[%s1070_s25 + $0x68] sm:$0xff]  }
  0x15   : > { %938 = vmatprep.mubr.msk.bf16.mxu1 %vm380_vm1, %v983_v7  ;;  %v990_v14 = vld [vmem:[%s1070_s25 + $0x30] sm:$0xff]   ;;  %v992_v16 = vld [vmem:[%s1070_s25 + $0x38] sm:$0xff]  }
  0x16   : > { %v991_v15 = vld [vmem:[%s1070_s25 + $0x70] sm:$0xff]   ;;  %v993_v17 = vld [vmem:[%s1070_s25 + $0x78] sm:$0xff]  }
  0x1b   : > { %923 = vmatmul.mubr.msk.bf16.gmra.mrb[4].mxu0 %vm380_vm1, %v984_v8 }
  0x1c   : > { %939 = vmatmul.mubr.msk.bf16.gmra.mrb[4].mxu1 %vm380_vm1, %v985_v9  ;;  %926 = vmatprep.mubr.msk.bf16.mxu0 %vm380_vm1, %v986_v10 }
  0x1d   : > { %942 = vmatprep.mubr.msk.bf16.mxu1 %vm380_vm1, %v987_v11 }
  0x23   : > { %927 = vmatmul.mubr.msk.bf16.gmra.mrb[8].mxu0 %vm380_vm1, %v988_v12 }
  0x24   : > { %943 = vmatmul.mubr.msk.bf16.gmra.mrb[8].mxu1 %vm380_vm1, %v989_v13  ;;  %930 = vmatprep.mubr.msk.bf16.mxu0 %vm380_vm1, %v990_v14 }
  0x25   : > { %946 = vmatprep.mubr.msk.bf16.mxu1 %vm380_vm1, %v991_v15 }
  0x2b   : > { %931 = vmatmul.mubr.msk.bf16.gmra.mrb[12].mxu0 %vm380_vm1, %v992_v16 }
  0x2c   : > { %947 = vmatmul.mubr.msk.bf16.gmra.mrb[12].mxu1 %vm380_vm1, %v993_v17 }
  0xe6   : > { %v920_v19 = vpop.f32.mrb[0].mxu0 }
  0xe7   : > { %v603_v21 = vmul.f32 %v920_v19, %v1107_v18  ;;  %v936_v22 = vpop.f32.mrb[0].mxu1  ;;  %v467_v23 = vpop.f32.mrb[1].mxu0 }
  0xe8   : > { %v619_v24 = vmul.f32 %v936_v22, %v1107_v18  ;;  %v601_v25 = vmul.f32 %v1107_v18, %v467_v23  ;;  %v531_v26 = vpop.f32.mrb[1].mxu1  ;;  %v921_v27 = vpop.f32.mrb[2].mxu0 }
  0xe9   : > { %v642_v28 = vadd.f32 %v1112_v20, %v603_v21  ;;  %v617_v29 = vmul.f32 %v1107_v18, %v531_v26  ;;  %v604_v30 = vmul.f32 %v921_v27, %v1107_v18  ;;  %v937_v31 = vpop.f32.mrb[2].mxu1  ;;  %v470_v32 = vpop.f32.mrb[3].mxu0 }
  0xea   : > { %v658_v33 = vadd.f32 %v1112_v20, %v619_v24  ;;  %v640_v34 = vadd.f32 %v1112_v20, %v601_v25  ;;  %v620_v35 = vmul.f32 %v937_v31, %v1107_v18  ;;  %v602_v36 = vmul.f32 %v1107_v18, %v470_v32  ;;  %v534_v37 = vpop.f32.mrb[3].mxu1 }
  0xeb   : > { %v674_v38 = vmax.f32 %v642_v28, 0.0  ;;  %v656_v39 = vadd.f32 %v1112_v20, %v617_v29  ;;  %v643_v40 = vadd.f32 %v1112_v20, %v604_v30  ;;  %v618_v41 = vmul.f32 %v1107_v18, %v534_v37 }
  0xec   : > { %v690_v42 = vmax.f32 %v658_v33, 0.0  ;;  %v672_v43 = vmax.f32 %v640_v34, 0.0  ;;  %v659_v44 = vadd.f32 %v1112_v20, %v620_v35  ;;  %v641_v45 = vadd.f32 %v1112_v20, %v602_v36 }
  0xed   : > { %707 = vst.msk [vmem:[%s1124_s7 + $0x10] sm:$0xff] %vm704_vm2, %v674_v38  ;;  %v688_v46 = vmax.f32 %v656_v39, 0.0  ;;  %v675_v47 = vmax.f32 %v643_v40, 0.0  ;;  %v657_v48 = vadd.f32 %v1112_v20, %v618_v41 }
  0xee   : > { %723 = vst.msk [vmem:[%s1124_s7 + $0x90] sm:$0xff] %vm704_vm2, %v690_v42  ;;  %705 = vst.msk [vmem:[%s1124_s7] sm:$0xff] %vm704_vm2, %v672_v43  ;;  %v691_v49 = vmax.f32 %v659_v44, 0.0  ;;  %v673_v50 = vmax.f32 %v641_v45, 0.0  ;;  %v924_v51 = vpop.f32.mrb[4].mxu0 }
  0xef   : > { %721 = vst.msk [vmem:[%s1124_s7 + $0x80] sm:$0xff] %vm704_vm2, %v688_v46  ;;  %708 = vst.msk [vmem:[%s1124_s7 + $0x18] sm:$0xff] %vm704_vm2, %v675_v47  ;;  %v689_v52 = vmax.f32 %v657_v48, 0.0  ;;  %v607_v53 = vmul.f32 %v924_v51, %v1107_v18  ;;  %v940_v54 = vpop.f32.mrb[4].mxu1  ;;  %v483_v55 = vpop.f32.mrb[5].mxu0 }
  0xf0   : > { %724 = vst.msk [vmem:[%s1124_s7 + $0x98] sm:$0xff] %vm704_vm2, %v691_v49  ;;  %706 = vst.msk [vmem:[%s1124_s7 + $0x8] sm:$0xff] %vm704_vm2, %v673_v50  ;;  %v623_v56 = vmul.f32 %v940_v54, %v1107_v18  ;;  %v605_v57 = vmul.f32 %v1107_v18, %v483_v55  ;;  %v547_v58 = vpop.f32.mrb[5].mxu1  ;;  %v925_v59 = vpop.f32.mrb[6].mxu0 }
  0xf1   : > { %722 = vst.msk [vmem:[%s1124_s7 + $0x88] sm:$0xff] %vm704_vm2, %v689_v52  ;;  %v646_v60 = vadd.f32 %v1112_v20, %v607_v53  ;;  %v621_v61 = vmul.f32 %v1107_v18, %v547_v58  ;;  %v608_v62 = vmul.f32 %v925_v59, %v1107_v18  ;;  %v941_v63 = vpop.f32.mrb[6].mxu1  ;;  %v486_v0 = vpop.f32.mrb[7].mxu0 }
  0xf2   : > { %v662_v1 = vadd.f32 %v1112_v20, %v623_v56  ;;  %v644_v2 = vadd.f32 %v1112_v20, %v605_v57  ;;  %v624_v3 = vmul.f32 %v941_v63, %v1107_v18  ;;  %v606_v4 = vmul.f32 %v1107_v18, %v486_v0  ;;  %v550_v5 = vpop.f32.mrb[7].mxu1 }
  0xf3   : > { %v678_v6 = vmax.f32 %v646_v60, 0.0  ;;  %v660_v7 = vadd.f32 %v1112_v20, %v621_v61  ;;  %v647_v8 = vadd.f32 %v1112_v20, %v608_v62  ;;  %v622_v9 = vmul.f32 %v1107_v18, %v550_v5 }
  0xf4   : > { %v694_v10 = vmax.f32 %v662_v1, 0.0  ;;  %v676_v11 = vmax.f32 %v644_v2, 0.0  ;;  %v663_v12 = vadd.f32 %v1112_v20, %v624_v3  ;;  %v645_v13 = vadd.f32 %v1112_v20, %v606_v4 }
  0xf5   : > { %711 = vst.msk [vmem:[%s1124_s7 + $0x30] sm:$0xff] %vm704_vm2, %v678_v6  ;;  %v692_v14 = vmax.f32 %v660_v7, 0.0  ;;  %v679_v15 = vmax.f32 %v647_v8, 0.0  ;;  %v661_v16 = vadd.f32 %v1112_v20, %v622_v9 }
  0xf6   : > { %727 = vst.msk [vmem:[%s1124_s7 + $0xb0] sm:$0xff] %vm704_vm2, %v694_v10  ;;  %709 = vst.msk [vmem:[%s1124_s7 + $0x20] sm:$0xff] %vm704_vm2, %v676_v11  ;;  %v695_v17 = vmax.f32 %v663_v12, 0.0  ;;  %v677_v19 = vmax.f32 %v645_v13, 0.0  ;;  %v928_v21 = vpop.f32.mrb[8].mxu0 }
  0xf7   : > { %725 = vst.msk [vmem:[%s1124_s7 + $0xa0] sm:$0xff] %vm704_vm2, %v692_v14  ;;  %712 = vst.msk [vmem:[%s1124_s7 + $0x38] sm:$0xff] %vm704_vm2, %v679_v15  ;;  %v693_v22 = vmax.f32 %v661_v16, 0.0  ;;  %v611_v23 = vmul.f32 %v928_v21, %v1107_v18  ;;  %v944_v24 = vpop.f32.mrb[8].mxu1  ;;  %v499_v25 = vpop.f32.mrb[9].mxu0 }
  0xf8   : > { %728 = vst.msk [vmem:[%s1124_s7 + $0xb8] sm:$0xff] %vm704_vm2, %v695_v17  ;;  %710 = vst.msk [vmem:[%s1124_s7 + $0x28] sm:$0xff] %vm704_vm2, %v677_v19  ;;  %v627_v26 = vmul.f32 %v944_v24, %v1107_v18  ;;  %v609_v27 = vmul.f32 %v1107_v18, %v499_v25  ;;  %v563_v28 = vpop.f32.mrb[9].mxu1  ;;  %v929_v29 = vpop.f32.mrb[10].mxu0 }
  0xf9   : > { %726 = vst.msk [vmem:[%s1124_s7 + $0xa8] sm:$0xff] %vm704_vm2, %v693_v22  ;;  %v650_v30 = vadd.f32 %v1112_v20, %v611_v23  ;;  %v625_v31 = vmul.f32 %v1107_v18, %v563_v28  ;;  %v612_v32 = vmul.f32 %v929_v29, %v1107_v18  ;;  %v945_v33 = vpop.f32.mrb[10].mxu1  ;;  %v502_v34 = vpop.f32.mrb[11].mxu0 }
  0xfa   : > { %v666_v35 = vadd.f32 %v1112_v20, %v627_v26  ;;  %v648_v36 = vadd.f32 %v1112_v20, %v609_v27  ;;  %v628_v37 = vmul.f32 %v945_v33, %v1107_v18  ;;  %v610_v38 = vmul.f32 %v1107_v18, %v502_v34  ;;  %v566_v39 = vpop.f32.mrb[11].mxu1 }
  0xfb   : > { %v682_v40 = vmax.f32 %v650_v30, 0.0  ;;  %v664_v41 = vadd.f32 %v1112_v20, %v625_v31  ;;  %v651_v42 = vadd.f32 %v1112_v20, %v612_v32  ;;  %v626_v43 = vmul.f32 %v1107_v18, %v566_v39 }
  0xfc   : > { %v698_v44 = vmax.f32 %v666_v35, 0.0  ;;  %v680_v45 = vmax.f32 %v648_v36, 0.0  ;;  %v667_v46 = vadd.f32 %v1112_v20, %v628_v37  ;;  %v649_v47 = vadd.f32 %v1112_v20, %v610_v38 }
  0xfd   : > { %715 = vst.msk [vmem:[%s1124_s7 + $0x50] sm:$0xff] %vm704_vm2, %v682_v40  ;;  %v696_v48 = vmax.f32 %v664_v41, 0.0  ;;  %v683_v49 = vmax.f32 %v651_v42, 0.0  ;;  %v665_v50 = vadd.f32 %v1112_v20, %v626_v43 }
  0xfe   : > { %731 = vst.msk [vmem:[%s1124_s7 + $0xd0] sm:$0xff] %vm704_vm2, %v698_v44  ;;  %713 = vst.msk [vmem:[%s1124_s7 + $0x40] sm:$0xff] %vm704_vm2, %v680_v45  ;;  %v699_v51 = vmax.f32 %v667_v46, 0.0  ;;  %v681_v52 = vmax.f32 %v649_v47, 0.0  ;;  %v932_v53 = vpop.f32.mrb[12].mxu0 }
  0xff   : > { %729 = vst.msk [vmem:[%s1124_s7 + $0xc0] sm:$0xff] %vm704_vm2, %v696_v48  ;;  %716 = vst.msk [vmem:[%s1124_s7 + $0x58] sm:$0xff] %vm704_vm2, %v683_v49  ;;  %v697_v54 = vmax.f32 %v665_v50, 0.0  ;;  %v615_v55 = vmul.f32 %v932_v53, %v1107_v18  ;;  %v948_v56 = vpop.f32.mrb[12].mxu1  ;;  %v515_v57 = vpop.f32.mrb[13].mxu0 }
 0x100   : > { %732 = vst.msk [vmem:[%s1124_s7 + $0xd8] sm:$0xff] %vm704_vm2, %v699_v51  ;;  %714 = vst.msk [vmem:[%s1124_s7 + $0x48] sm:$0xff] %vm704_vm2, %v681_v52  ;;  %v631_v58 = vmul.f32 %v948_v56, %v1107_v18  ;;  %v613_v59 = vmul.f32 %v1107_v18, %v515_v57  ;;  %v579_v60 = vpop.f32.mrb[13].mxu1  ;;  %v933_v61 = vpop.f32.mrb[14].mxu0 }
 0x101   : > { %730 = vst.msk [vmem:[%s1124_s7 + $0xc8] sm:$0xff] %vm704_vm2, %v697_v54  ;;  %v654_v62 = vadd.f32 %v1112_v20, %v615_v55  ;;  %v629_v63 = vmul.f32 %v1107_v18, %v579_v60  ;;  %v616_v0 = vmul.f32 %v933_v61, %v1107_v18  ;;  %v949_v1 = vpop.f32.mrb[14].mxu1  ;;  %v518_v2 = vpop.f32.mrb[15].mxu0 }
 0x102   : > { %v670_v3 = vadd.f32 %v1112_v20, %v631_v58  ;;  %v652_v4 = vadd.f32 %v1112_v20, %v613_v59  ;;  %v632_v5 = vmul.f32 %v949_v1, %v1107_v18  ;;  %v614_v6 = vmul.f32 %v1107_v18, %v518_v2  ;;  %v582_v7 = vpop.f32.mrb[15].mxu1 }
 0x103   : > { %v686_v8 = vmax.f32 %v654_v62, 0.0  ;;  %v668_v9 = vadd.f32 %v1112_v20, %v629_v63  ;;  %v655_v10 = vadd.f32 %v1112_v20, %v616_v0  ;;  %v630_v11 = vmul.f32 %v1107_v18, %v582_v7 }
 0x104   : > { %v702_v12 = vmax.f32 %v670_v3, 0.0  ;;  %v684_v13 = vmax.f32 %v652_v4, 0.0  ;;  %v671_v14 = vadd.f32 %v1112_v20, %v632_v5  ;;  %v653_v15 = vadd.f32 %v1112_v20, %v614_v6 }
 0x105   : > { %719 = vst.msk [vmem:[%s1124_s7 + $0x70] sm:$0xff] %vm704_vm2, %v686_v8  ;;  %v700_v16 = vmax.f32 %v668_v9, 0.0  ;;  %v687_v17 = vmax.f32 %v655_v10, 0.0  ;;  %v669_v19 = vadd.f32 %v1112_v20, %v630_v11 }
 0x106   : > { %735 = vst.msk [vmem:[%s1124_s7 + $0xf0] sm:$0xff] %vm704_vm2, %v702_v12  ;;  %717 = vst.msk [vmem:[%s1124_s7 + $0x60] sm:$0xff] %vm704_vm2, %v684_v13  ;;  %v703_v18 = vmax.f32 %v671_v14, 0.0  ;;  %v685_v21 = vmax.f32 %v653_v15, 0.0 }
 0x107   : > { %733 = vst.msk [vmem:[%s1124_s7 + $0xe0] sm:$0xff] %vm704_vm2, %v700_v16  ;;  %720 = vst.msk [vmem:[%s1124_s7 + $0x78] sm:$0xff] %vm704_vm2, %v687_v17  ;;  %v701_v22 = vmax.f32 %v669_v19, 0.0 }
 0x108   : > { %736 = vst.msk [vmem:[%s1124_s7 + $0xf8] sm:$0xff] %vm704_vm2, %v703_v18  ;;  %718 = vst.msk [vmem:[%s1124_s7 + $0x68] sm:$0xff] %vm704_vm2, %v685_v21 }
 0x109   : > { %734 = vst.msk [vmem:[%s1124_s7 + $0xe8] sm:$0xff] %vm704_vm2, %v701_v22 }
 0x10a PF: > { %s14_s17 = sadd.s32 1, %s1016_s17   ;;  %s1262_s15 = smov %s1012_s16 }
 0x10b   : > { %p11_p5 = scmp.ge.s32.totalorder %s14_s17, 4   ;;  %s1263_s16 = smov %s1265_s18 }
 0x10d   :  { %13 = sbr.rel (!%p11_p5) target bundleno = 2 (0x2), region = 75 }

</bundles_post_ra>
